<compile_context>
chip_gen: v6e
topology: v6e:2x2x1
jax: 0.10.0
libtpu: 0.0.40
codegen_flags: <defaults>
</compile_context>

<pallas_src>
import functools

import jax
import jax.numpy as jnp
from jax.experimental import pallas as pl
from jax.experimental.pallas import tpu as pltpu


def _round_up(x, m):
    return (x + m - 1) // m * m


def _conv_norm_act_kernel(x_ref, w_ref, mask_ref, o_ref, rhs_ref, acc_ref, *,
                          k, s, cp, b_blk, wq, inv_n, l_pad, eps, neg_slope):
    # x_ref:    (B, s*s*Cp, Lq_pad)  bf16  stride-phase-decomposed padded input
    # w_ref:    (Co, k*k*Cp)         bf16  dense stacked-tap conv weights
    # mask_ref: (1, L_pad)           f32   1.0 on real output positions, else 0
    # o_ref:    (B, Co, L_pad)       out dtype, gapped NCHW-flattened output
    # rhs_ref:  (k*k*Cp, B*L_pad)    bf16  VMEM scratch: stacked-tap RHS
    # acc_ref:  (Co, B*L_pad)        f32   VMEM scratch: matmul result

    # Pack every conv tap of every image into one contiguous RHS slab.  Each
    # tap is a contiguous, lane-shifted slice of the phase-decomposed input.
    for b in range(b_blk):
        for i in range(k):                       # static unrolled k*k tap loop
            for j in range(k):
                tap = i * k + j
                pidx = (i % s) * s + (j % s)     # stride phase of this tap
                off = (i // s) * wq + (j // s)   # lane offset of this tap
                rhs_ref[pl.ds(tap * cp, cp), pl.ds(b * l_pad, l_pad)] = (
                    x_ref[b, pl.ds(pidx * cp, cp), pl.ds(off, l_pad)])

    # Single MXU matmul with K = k*k*Cp contraction, f32 accumulation.
    acc_ref[...] = jnp.dot(w_ref[...], rhs_ref[...],
                           preferred_element_type=jnp.float32)

    # InstanceNorm2d (affine=False, biased variance) + LeakyReLU, per image.
    # Gap/pad lanes are excluded from the statistics via the mask.  Two-pass
    # (mean, then centered sum-of-squares) in f32 for numerical robustness.
    mask = mask_ref[...]                                     # (1, L_pad)
    for b in range(b_blk):
        y = acc_ref[:, pl.ds(b * l_pad, l_pad)]              # (Co, L_pad) f32
        mean = jnp.sum(y * mask, axis=1, keepdims=True) * inv_n
        cent = y - mean
        cm = cent * mask
        var = jnp.sum(cm * cm, axis=1, keepdims=True) * inv_n
        out = cent * jax.lax.rsqrt(var + eps)
        out = jnp.where(out >= 0, out, neg_slope * out)      # LeakyReLU / ReLU
        o_ref[b] = out.astype(o_ref.dtype)


def conv_norm_act(x, weight, bias=None, *, stride, padding, act_type="lrelu",
                  eps=1e-5, out_dtype=jnp.float32, images_per_block=None):
    """Forward pass matching ConvNormAct.

    x:      (N, C, H, W)   float32
    weight: (Co, C, k, k)  float32 (PyTorch Conv2d layout)
    bias:   (Co,)          unused -- cancelled exactly by InstanceNorm's mean
                           subtraction (affine=False).  Note: only valid
                           because the norm immediately follows the conv.
    Returns (N, Co, Ho, Wo) in out_dtype.
    """
    del bias
    N, C, H, W = x.shape
    Co, Cw, kh, kw = weight.shape
    assert C == Cw and kh == kw
    k, s, p = kh, stride, padding

    Hp, Wp = H + 2 * p, W + 2 * p
    Ho, Wo = (Hp - k) // s + 1, (Wp - k) // s + 1
    Hq, Wq = -(-Hp // s), -(-Wp // s)            # ceil division
    Cp = _round_up(C, 8)                         # sublane-align channel slabs
    kkCp = k * k * Cp

    # ---- stride-phase decomposition (input-sized pad + reshape + transpose) --
    #   xph[n, pi*s+pj, c, hq*Wq+wq] = xpad[n, c, pi + s*hq, pj + s*wq]
    # TODO(synk): for large inputs do this split in-kernel (memory_space=pl.ANY
    # + manual strided make_async_copy) to save one input-sized HBM round trip.
    xpad = jnp.pad(x, ((0, 0), (0, Cp - C),
                       (p, s * Hq - H - p), (p, s * Wq - W - p)))
    xph = xpad.reshape(N, Cp, Hq, s, Wq, s).transpose(0, 3, 5, 1, 2, 4)
    xph = xph.reshape(N, s * s * Cp, Hq * Wq)

    # Gapped flattened output layout: t = ho*Wq + wo (valid iff wo < Wo, t < L).
    L = Ho * Wq
    L_pad = _round_up(L, 128)                    # lane-dense output width
    max_off = ((k - 1) // s) * Wq + (k - 1) // s
    Lq_pad = _round_up(max(Hq * Wq, L_pad + max_off), 128)
    xph = jnp.pad(xph, ((0, 0), (0, 0), (0, Lq_pad - Hq * Wq)))
    xph = xph.astype(jnp.bfloat16)               # bf16 for the MXU / HBM bytes

    # ---- batching: few fat grid steps; keep >= 2 so both v7x TCs get work ----
    if images_per_block is None:
        images_per_block = max(1, -(-N // 2))
    B = max(1, min(int(images_per_block), N))

    out_isz = jnp.dtype(out_dtype).itemsize

    def vmem_bytes(b_blk):
        in_blk = b_blk * s * s * Cp * Lq_pad * 2     # bf16, double-buffered
        out_blk = b_blk * Co * L_pad * out_isz       # double-buffered
        w_blk = Co * kkCp * 2
        m_blk = L_pad * 4
        rhs = kkCp * b_blk * L_pad * 2
        acc = Co * b_blk * L_pad * 4
        return 2 * (in_blk + out_blk) + w_blk + m_blk + rhs + acc

    # Shrink the per-step batch until blocks fit a v7x-safe (64 MiB/TC) budget.
    # TODO(synk): for very large spatial extents even B=1 can exceed this; then
    # add a second "arbitrary" grid axis over output-row chunks with online
    # sum / sum-of-squares accumulators (stats pass + normalize pass).
    while B > 1 and vmem_bytes(B) > 48 * 1024 * 1024:
        B = (B + 1) // 2

    n_blocks = -(-N // B)
    N_pad = n_blocks * B
    if N_pad > N:                                # zero-pad extra images
        xph = jnp.pad(xph, ((0, N_pad - N), (0, 0), (0, 0)))

    # Dense stacked-tap weight: w_flat[co, (i*k+j)*Cp + c] = weight[co, c, i, j]
    w_flat = jnp.pad(weight, ((0, 0), (0, Cp - C), (0, 0), (0, 0)))
    w_flat = w_flat.transpose(0, 2, 3, 1).reshape(Co, kkCp).astype(jnp.bfloat16)

    # Validity mask for the gapped layout (excludes gap columns and tail pad).
    t = jnp.arange(L_pad)
    mask = (((t % Wq) < Wo) & (t < L)).astype(jnp.float32).reshape(1, L_pad)

    if act_type == "lrelu":
        neg_slope = 0.2
    elif act_type == "relu":
        neg_slope = 0.0
    else:
        neg_slope = 1.0                          # identity (no activation)

    kernel = functools.partial(
        _conv_norm_act_kernel, k=k, s=s, cp=Cp, b_blk=B, wq=Wq,
        inv_n=1.0 / float(Ho * Wo), l_pad=L_pad, eps=eps, neg_slope=neg_slope)

    cost = pl.CostEstimate(
        flops=2 * k * k * C * Co * Ho * Wo * N,
        transcendentals=N * Co,
        bytes_accessed=(N_pad * s * s * Cp * Lq_pad * 2 + Co * kkCp * 2
                        + L_pad * 4 + N_pad * Co * L_pad * out_isz))

    vmem_limit = int(min(max(vmem_bytes(B) * 1.5, 16 * 1024 * 1024),
                         64 * 1024 * 1024))

    out = pl.pallas_call(
        kernel,
        out_shape=jax.ShapeDtypeStruct((N_pad, Co, L_pad), out_dtype),
        grid_spec=pltpu.PrefetchScalarGridSpec(
            num_scalar_prefetch=0,
            grid=(n_blocks,),
            in_specs=[
                pl.BlockSpec((B, s * s * Cp, Lq_pad), lambda n: (n, 0, 0)),
                pl.BlockSpec((Co, kkCp), lambda n: (0, 0)),
                pl.BlockSpec((1, L_pad), lambda n: (0, 0)),
            ],
            out_specs=pl.BlockSpec((B, Co, L_pad), lambda n: (n, 0, 0)),
            scratch_shapes=[
                pltpu.VMEM((kkCp, B * L_pad), jnp.bfloat16),   # stacked RHS
                pltpu.VMEM((Co, B * L_pad), jnp.float32),      # matmul result
            ]),
        compiler_params=pltpu.CompilerParams(
            dimension_semantics=("parallel",),
            vmem_limit_bytes=vmem_limit),
        cost_estimate=cost,
    )(xph, w_flat, mask)                         # (N_pad, Co, L_pad)

    # Crop gap/pad columns: (N_pad, Co, L_pad) -> (N, Co, Ho, Wo), already NCHW.
    # TODO(synk): hand the gapped (N, Co, L_pad) layout to a fused consumer (or
    # choose padding with Wq == Wo) to skip this output-sized copy.
    out = out[:N, :, :L].reshape(N, Co, Ho, Wq)[:, :, :, :Wo]
    return out


if __name__ == "__main__":
    # Module config: ConvNormAct(in_ch=4, out_ch=8, kernel_size=4, stride=2,
    #                            padding=1, act_type='lrelu')
    in_ch, out_ch, ksize, stride, padding = 4, 8, 4, 2, 1
    N, H, W = 2, 16, 16

    key = jax.random.PRNGKey(0)
    kx, kw_, kb = jax.random.split(key, 3)
    x = jax.random.normal(kx, (N, in_ch, H, W), dtype=jnp.float32)
    fan_in = in_ch * ksize * ksize
    bound = 1.0 / (fan_in ** 0.5)
    weight = jax.random.uniform(kw_, (out_ch, in_ch, ksize, ksize),
                                minval=-bound, maxval=bound, dtype=jnp.float32)
    bias = jax.random.uniform(kb, (out_ch,), minval=-bound, maxval=bound,
                              dtype=jnp.float32)

    y = conv_norm_act(x, weight, bias, stride=stride, padding=padding,
                      act_type="lrelu")
    y = jax.block_until_ready(y)

    # Reference: conv (with bias) + InstanceNorm2d + LeakyReLU(0.2).
    def reference(xr, wr):
        conv = jax.lax.conv_general_dilated(
            xr, wr, (stride, stride),
            ((padding, padding), (padding, padding)),
            dimension_numbers=("NCHW", "OIHW", "NCHW"))
        conv = conv + bias[None, :, None, None]
        m = conv.mean(axis=(2, 3), keepdims=True)
        v = ((conv - m) ** 2).mean(axis=(2, 3), keepdims=True)
        nrm = (conv - m) * jax.lax.rsqrt(v + 1e-5)
        return jnp.where(nrm >= 0, nrm, 0.2 * nrm)

    # Tight check against a reference fed the same bf16-rounded inputs, plus a
    # loose semantic check against the exact f32 reference (bf16 MXU inputs).
    ref_bf16 = reference(x.astype(jnp.bfloat16).astype(jnp.float32),
                         weight.astype(jnp.bfloat16).astype(jnp.float32))
    ref_f32 = reference(x, weight)

    assert y.shape == (N, out_ch, H // 2, W // 2)
    assert jnp.max(jnp.abs(y - ref_bf16)) < 3e-3
    assert jnp.max(jnp.abs(y - ref_f32)) < 1e-1

    print("KERNEL_OK")
</pallas_src>

<mosaic_0001>
module attributes {stable_mosaic.version = 11 : i64} {
  func.func @_conv_norm_act_kernel(%arg0: i32, %arg1: memref<1x32x256xbf16, #tpu.memory_space<vmem>>, %arg2: memref<8x128xbf16, #tpu.memory_space<vmem>>, %arg3: memref<1x128xf32, #tpu.memory_space<vmem>>, %arg4: memref<1x8x128xf32, #tpu.memory_space<vmem>>, %arg5: memref<128x128xbf16, #tpu.memory_space<vmem>>, %arg6: memref<8x128xf32, #tpu.memory_space<vmem>>) attributes {dimension_semantics = [#tpu.dimension_semantics<parallel>], iteration_bounds = array<i64: 2>, scalar_prefetch = 0 : i64, scratch_operands = 2 : i64, tpu.core_type = #tpu.core_type<tc>, window_params = [{transform_indices = @transform_0, window_bounds = array<i64: 1, 32, 256>}, {pipeline_mode = #tpu.pipeline_mode<synchronous>, transform_indices = @transform_1, window_bounds = array<i64: 8, 128>}, {pipeline_mode = #tpu.pipeline_mode<synchronous>, transform_indices = @transform_2, window_bounds = array<i64: 1, 128>}, {transform_indices = @transform_3, window_bounds = array<i64: 1, 8, 128>}]} {
    %c0 = arith.constant 0 : index
    %c0_0 = arith.constant 0 : index
    %c0_1 = arith.constant 0 : index
    %0 = vector.load %arg1[%c0, %c0_0, %c0_1] : memref<1x32x256xbf16, #tpu.memory_space<vmem>>, vector<1x8x128xbf16>
    %1 = vector.shape_cast %0 : vector<1x8x128xbf16> to vector<8x128xbf16>
    %c0_2 = arith.constant 0 : index
    %c0_3 = arith.constant 0 : index
    %2 = vector.load %arg5[%c0_2, %c0_3] : memref<128x128xbf16, #tpu.memory_space<vmem>>, vector<8x128xbf16>
    tpu.vector_store %arg5[%c0_2, %c0_3], %1 {strides = array<i32>} : memref<128x128xbf16, #tpu.memory_space<vmem>>, vector<8x128xbf16>,
    %c0_4 = arith.constant 0 : index
    %c8 = arith.constant 8 : index
    %c0_5 = arith.constant 0 : index
    %3 = vector.load %arg1[%c0_4, %c8, %c0_5] : memref<1x32x256xbf16, #tpu.memory_space<vmem>>, vector<1x8x128xbf16>
    %4 = vector.shape_cast %3 : vector<1x8x128xbf16> to vector<8x128xbf16>
    %c8_6 = arith.constant 8 : index
    %c0_7 = arith.constant 0 : index
    %5 = vector.load %arg5[%c8_6, %c0_7] : memref<128x128xbf16, #tpu.memory_space<vmem>>, vector<8x128xbf16>
    tpu.vector_store %arg5[%c8_6, %c0_7], %4 {strides = array<i32>} : memref<128x128xbf16, #tpu.memory_space<vmem>>, vector<8x128xbf16>,
    %c0_8 = arith.constant 0 : index
    %c0_9 = arith.constant 0 : index
    %c1 = arith.constant 1 : index
    %6 = vector.load %arg1[%c0_8, %c0_9, %c1] : memref<1x32x256xbf16, #tpu.memory_space<vmem>>, vector<1x8x128xbf16>
    %7 = vector.shape_cast %6 : vector<1x8x128xbf16> to vector<8x128xbf16>
    %c16 = arith.constant 16 : index
    %c0_10 = arith.constant 0 : index
    %8 = vector.load %arg5[%c16, %c0_10] : memref<128x128xbf16, #tpu.memory_space<vmem>>, vector<8x128xbf16>
    tpu.vector_store %arg5[%c16, %c0_10], %7 {strides = array<i32>} : memref<128x128xbf16, #tpu.memory_space<vmem>>, vector<8x128xbf16>,
    %c0_11 = arith.constant 0 : index
    %c8_12 = arith.constant 8 : index
    %c1_13 = arith.constant 1 : index
    %9 = vector.load %arg1[%c0_11, %c8_12, %c1_13] : memref<1x32x256xbf16, #tpu.memory_space<vmem>>, vector<1x8x128xbf16>
    %10 = vector.shape_cast %9 : vector<1x8x128xbf16> to vector<8x128xbf16>
    %c24 = arith.constant 24 : index
    %c0_14 = arith.constant 0 : index
    %11 = vector.load %arg5[%c24, %c0_14] : memref<128x128xbf16, #tpu.memory_space<vmem>>, vector<8x128xbf16>
    tpu.vector_store %arg5[%c24, %c0_14], %10 {strides = array<i32>} : memref<128x128xbf16, #tpu.memory_space<vmem>>, vector<8x128xbf16>,
    %c0_15 = arith.constant 0 : index
    %c16_16 = arith.constant 16 : index
    %c0_17 = arith.constant 0 : index
    %12 = vector.load %arg1[%c0_15, %c16_16, %c0_17] : memref<1x32x256xbf16, #tpu.memory_space<vmem>>, vector<1x8x128xbf16>
    %13 = vector.shape_cast %12 : vector<1x8x128xbf16> to vector<8x128xbf16>
    %c32 = arith.constant 32 : index
    %c0_18 = arith.constant 0 : index
    %14 = vector.load %arg5[%c32, %c0_18] : memref<128x128xbf16, #tpu.memory_space<vmem>>, vector<8x128xbf16>
    tpu.vector_store %arg5[%c32, %c0_18], %13 {strides = array<i32>} : memref<128x128xbf16, #tpu.memory_space<vmem>>, vector<8x128xbf16>,
    %c0_19 = arith.constant 0 : index
    %c24_20 = arith.constant 24 : index
    %c0_21 = arith.constant 0 : index
    %15 = vector.load %arg1[%c0_19, %c24_20, %c0_21] : memref<1x32x256xbf16, #tpu.memory_space<vmem>>, vector<1x8x128xbf16>
    %16 = vector.shape_cast %15 : vector<1x8x128xbf16> to vector<8x128xbf16>
    %c40 = arith.constant 40 : index
    %c0_22 = arith.constant 0 : index
    %17 = vector.load %arg5[%c40, %c0_22] : memref<128x128xbf16, #tpu.memory_space<vmem>>, vector<8x128xbf16>
    tpu.vector_store %arg5[%c40, %c0_22], %16 {strides = array<i32>} : memref<128x128xbf16, #tpu.memory_space<vmem>>, vector<8x128xbf16>,
    %c0_23 = arith.constant 0 : index
    %c16_24 = arith.constant 16 : index
    %c1_25 = arith.constant 1 : index
    %18 = vector.load %arg1[%c0_23, %c16_24, %c1_25] : memref<1x32x256xbf16, #tpu.memory_space<vmem>>, vector<1x8x128xbf16>
    %19 = vector.shape_cast %18 : vector<1x8x128xbf16> to vector<8x128xbf16>
    %c48 = arith.constant 48 : index
    %c0_26 = arith.constant 0 : index
    %20 = vector.load %arg5[%c48, %c0_26] : memref<128x128xbf16, #tpu.memory_space<vmem>>, vector<8x128xbf16>
    tpu.vector_store %arg5[%c48, %c0_26], %19 {strides = array<i32>} : memref<128x128xbf16, #tpu.memory_space<vmem>>, vector<8x128xbf16>,
    %c0_27 = arith.constant 0 : index
    %c24_28 = arith.constant 24 : index
    %c1_29 = arith.constant 1 : index
    %21 = vector.load %arg1[%c0_27, %c24_28, %c1_29] : memref<1x32x256xbf16, #tpu.memory_space<vmem>>, vector<1x8x128xbf16>
    %22 = vector.shape_cast %21 : vector<1x8x128xbf16> to vector<8x128xbf16>
    %c56 = arith.constant 56 : index
    %c0_30 = arith.constant 0 : index
    %23 = vector.load %arg5[%c56, %c0_30] : memref<128x128xbf16, #tpu.memory_space<vmem>>, vector<8x128xbf16>
    tpu.vector_store %arg5[%c56, %c0_30], %22 {strides = array<i32>} : memref<128x128xbf16, #tpu.memory_space<vmem>>, vector<8x128xbf16>,
    %c0_31 = arith.constant 0 : index
    %c0_32 = arith.constant 0 : index
    %c9 = arith.constant 9 : index
    %24 = vector.load %arg1[%c0_31, %c0_32, %c9] : memref<1x32x256xbf16, #tpu.memory_space<vmem>>, vector<1x8x128xbf16>
    %25 = vector.shape_cast %24 : vector<1x8x128xbf16> to vector<8x128xbf16>
    %c64 = arith.constant 64 : index
    %c0_33 = arith.constant 0 : index
    %26 = vector.load %arg5[%c64, %c0_33] : memref<128x128xbf16, #tpu.memory_space<vmem>>, vector<8x128xbf16>
    tpu.vector_store %arg5[%c64, %c0_33], %25 {strides = array<i32>} : memref<128x128xbf16, #tpu.memory_space<vmem>>, vector<8x128xbf16>,
    %c0_34 = arith.constant 0 : index
    %c8_35 = arith.constant 8 : index
    %c9_36 = arith.constant 9 : index
    %27 = vector.load %arg1[%c0_34, %c8_35, %c9_36] : memref<1x32x256xbf16, #tpu.memory_space<vmem>>, vector<1x8x128xbf16>
    %28 = vector.shape_cast %27 : vector<1x8x128xbf16> to vector<8x128xbf16>
    %c72 = arith.constant 72 : index
    %c0_37 = arith.constant 0 : index
    %29 = vector.load %arg5[%c72, %c0_37] : memref<128x128xbf16, #tpu.memory_space<vmem>>, vector<8x128xbf16>
    tpu.vector_store %arg5[%c72, %c0_37], %28 {strides = array<i32>} : memref<128x128xbf16, #tpu.memory_space<vmem>>, vector<8x128xbf16>,
    %c0_38 = arith.constant 0 : index
    %c0_39 = arith.constant 0 : index
    %c10 = arith.constant 10 : index
    %30 = vector.load %arg1[%c0_38, %c0_39, %c10] : memref<1x32x256xbf16, #tpu.memory_space<vmem>>, vector<1x8x128xbf16>
    %31 = vector.shape_cast %30 : vector<1x8x128xbf16> to vector<8x128xbf16>
    %c80 = arith.constant 80 : index
    %c0_40 = arith.constant 0 : index
    %32 = vector.load %arg5[%c80, %c0_40] : memref<128x128xbf16, #tpu.memory_space<vmem>>, vector<8x128xbf16>
    tpu.vector_store %arg5[%c80, %c0_40], %31 {strides = array<i32>} : memref<128x128xbf16, #tpu.memory_space<vmem>>, vector<8x128xbf16>,
    %c0_41 = arith.constant 0 : index
    %c8_42 = arith.constant 8 : index
    %c10_43 = arith.constant 10 : index
    %33 = vector.load %arg1[%c0_41, %c8_42, %c10_43] : memref<1x32x256xbf16, #tpu.memory_space<vmem>>, vector<1x8x128xbf16>
    %34 = vector.shape_cast %33 : vector<1x8x128xbf16> to vector<8x128xbf16>
    %c88 = arith.constant 88 : index
    %c0_44 = arith.constant 0 : index
    %35 = vector.load %arg5[%c88, %c0_44] : memref<128x128xbf16, #tpu.memory_space<vmem>>, vector<8x128xbf16>
    tpu.vector_store %arg5[%c88, %c0_44], %34 {strides = array<i32>} : memref<128x128xbf16, #tpu.memory_space<vmem>>, vector<8x128xbf16>,
    %c0_45 = arith.constant 0 : index
    %c16_46 = arith.constant 16 : index
    %c9_47 = arith.constant 9 : index
    %36 = vector.load %arg1[%c0_45, %c16_46, %c9_47] : memref<1x32x256xbf16, #tpu.memory_space<vmem>>, vector<1x8x128xbf16>
    %37 = vector.shape_cast %36 : vector<1x8x128xbf16> to vector<8x128xbf16>
    %c96 = arith.constant 96 : index
    %c0_48 = arith.constant 0 : index
    %38 = vector.load %arg5[%c96, %c0_48] : memref<128x128xbf16, #tpu.memory_space<vmem>>, vector<8x128xbf16>
    tpu.vector_store %arg5[%c96, %c0_48], %37 {strides = array<i32>} : memref<128x128xbf16, #tpu.memory_space<vmem>>, vector<8x128xbf16>,
    %c0_49 = arith.constant 0 : index
    %c24_50 = arith.constant 24 : index
    %c9_51 = arith.constant 9 : index
    %39 = vector.load %arg1[%c0_49, %c24_50, %c9_51] : memref<1x32x256xbf16, #tpu.memory_space<vmem>>, vector<1x8x128xbf16>
    %40 = vector.shape_cast %39 : vector<1x8x128xbf16> to vector<8x128xbf16>
    %c104 = arith.constant 104 : index
    %c0_52 = arith.constant 0 : index
    %41 = vector.load %arg5[%c104, %c0_52] : memref<128x128xbf16, #tpu.memory_space<vmem>>, vector<8x128xbf16>
    tpu.vector_store %arg5[%c104, %c0_52], %40 {strides = array<i32>} : memref<128x128xbf16, #tpu.memory_space<vmem>>, vector<8x128xbf16>,
    %c0_53 = arith.constant 0 : index
    %c16_54 = arith.constant 16 : index
    %c10_55 = arith.constant 10 : index
    %42 = vector.load %arg1[%c0_53, %c16_54, %c10_55] : memref<1x32x256xbf16, #tpu.memory_space<vmem>>, vector<1x8x128xbf16>
    %43 = vector.shape_cast %42 : vector<1x8x128xbf16> to vector<8x128xbf16>
    %c112 = arith.constant 112 : index
    %c0_56 = arith.constant 0 : index
    %44 = vector.load %arg5[%c112, %c0_56] : memref<128x128xbf16, #tpu.memory_space<vmem>>, vector<8x128xbf16>
    tpu.vector_store %arg5[%c112, %c0_56], %43 {strides = array<i32>} : memref<128x128xbf16, #tpu.memory_space<vmem>>, vector<8x128xbf16>,
    %c0_57 = arith.constant 0 : index
    %c24_58 = arith.constant 24 : index
    %c10_59 = arith.constant 10 : index
    %45 = vector.load %arg1[%c0_57, %c24_58, %c10_59] : memref<1x32x256xbf16, #tpu.memory_space<vmem>>, vector<1x8x128xbf16>
    %46 = vector.shape_cast %45 : vector<1x8x128xbf16> to vector<8x128xbf16>
    %c120 = arith.constant 120 : index
    %c0_60 = arith.constant 0 : index
    %47 = vector.load %arg5[%c120, %c0_60] : memref<128x128xbf16, #tpu.memory_space<vmem>>, vector<8x128xbf16>
    tpu.vector_store %arg5[%c120, %c0_60], %46 {strides = array<i32>} : memref<128x128xbf16, #tpu.memory_space<vmem>>, vector<8x128xbf16>,
    %c0_61 = arith.constant 0 : index
    %c0_62 = arith.constant 0 : index
    %48 = vector.load %arg2[%c0_61, %c0_62] : memref<8x128xbf16, #tpu.memory_space<vmem>>, vector<8x128xbf16>
    %c0_63 = arith.constant 0 : index
    %c0_64 = arith.constant 0 : index
    %49 = vector.load %arg5[%c0_63, %c0_64] : memref<128x128xbf16, #tpu.memory_space<vmem>>, vector<128x128xbf16>
    %cst = arith.constant dense<0.000000e+00> : vector<8x128xf32>
    %50 = tpu.matmul %48, %49, %cst {dimension_numbers = #tpu.dot_dimension_numbers<[1], [0], [0], [1], [0, 0, 1, 1], [], []>} : vector<8x128xbf16>, vector<128x128xbf16>, vector<8x128xf32> -> vector<8x128xf32>
    %c0_65 = arith.constant 0 : index
    %c0_66 = arith.constant 0 : index
    %51 = vector.load %arg6[%c0_65, %c0_66] : memref<8x128xf32, #tpu.memory_space<vmem>>, vector<8x128xf32>
    tpu.vector_store %arg6[%c0_65, %c0_66], %50 {strides = array<i32>} : memref<8x128xf32, #tpu.memory_space<vmem>>, vector<8x128xf32>,
    %c0_67 = arith.constant 0 : index
    %c0_68 = arith.constant 0 : index
    %52 = vector.load %arg3[%c0_67, %c0_68] : memref<1x128xf32, #tpu.memory_space<vmem>>, vector<1x128xf32>
    %c0_69 = arith.constant 0 : index
    %c0_70 = arith.constant 0 : index
    %53 = vector.load %arg6[%c0_69, %c0_70] : memref<8x128xf32, #tpu.memory_space<vmem>>, vector<8x128xf32>
    %54 = vector.broadcast %52 : vector<1x128xf32> to vector<8x128xf32>
    %55 = arith.mulf %53, %54 : vector<8x128xf32>
    %cst_71 = arith.constant dense<0.000000e+00> : vector<8xf32>
    %56 = vector.multi_reduction <add>, %55, %cst_71 [1] : vector<8x128xf32> to vector<8xf32>
    %57 = vector.shape_cast %56 : vector<8xf32> to vector<8x1xf32>
    %cst_72 = arith.constant 1.562500e-02 : f32
    %58 = vector.broadcast %cst_72 : f32 to vector<8x1xf32>
    %59 = arith.mulf %57, %58 : vector<8x1xf32>
    %60 = vector.broadcast %59 : vector<8x1xf32> to vector<8x128xf32>
    %61 = arith.subf %53, %60 : vector<8x128xf32>
    %62 = vector.broadcast %52 : vector<1x128xf32> to vector<8x128xf32>
    %63 = arith.mulf %61, %62 : vector<8x128xf32>
    %64 = arith.mulf %63, %63 : vector<8x128xf32>
    %cst_73 = arith.constant dense<0.000000e+00> : vector<8xf32>
    %65 = vector.multi_reduction <add>, %64, %cst_73 [1] : vector<8x128xf32> to vector<8xf32>
    %66 = vector.shape_cast %65 : vector<8xf32> to vector<8x1xf32>
    %cst_74 = arith.constant 1.562500e-02 : f32
    %67 = vector.broadcast %cst_74 : f32 to vector<8x1xf32>
    %68 = arith.mulf %66, %67 : vector<8x1xf32>
    %cst_75 = arith.constant 9.99999974E-6 : f32
    %69 = vector.broadcast %cst_75 : f32 to vector<8x1xf32>
    %70 = arith.addf %68, %69 : vector<8x1xf32>
    %71 = math.rsqrt %70 : vector<8x1xf32>
    %72 = vector.broadcast %71 : vector<8x1xf32> to vector<8x128xf32>
    %73 = arith.mulf %61, %72 : vector<8x128xf32>
    %cst_76 = arith.constant 0.000000e+00 : f32
    %74 = vector.broadcast %cst_76 : f32 to vector<8x128xf32>
    %75 = arith.cmpf oge, %73, %74 : vector<8x128xf32>
    %cst_77 = arith.constant 2.000000e-01 : f32
    %76 = vector.broadcast %cst_77 : f32 to vector<8x128xf32>
    %77 = arith.mulf %76, %73 : vector<8x128xf32>
    %78 = arith.select %75, %73, %77 : vector<8x128xi1>, vector<8x128xf32>
    %c0_78 = arith.constant 0 : index
    %c0_79 = arith.constant 0 : index
    %c0_80 = arith.constant 0 : index
    %79 = vector.load %arg4[%c0_78, %c0_79, %c0_80] : memref<1x8x128xf32, #tpu.memory_space<vmem>>, vector<1x8x128xf32>
    %80 = vector.shape_cast %79 : vector<1x8x128xf32> to vector<8x128xf32>
    %81 = vector.shape_cast %78 : vector<8x128xf32> to vector<1x8x128xf32>
    tpu.vector_store %arg4[%c0_78, %c0_79, %c0_80], %81 {strides = array<i32>} : memref<1x8x128xf32, #tpu.memory_space<vmem>>, vector<1x8x128xf32>,
    return
  }
  func.func @transform_0(%arg0: i32) -> (i32, i32, i32) {
    %c0_i32 = arith.constant 0 : i32
    %c0_i32_0 = arith.constant 0 : i32
    %c0_i32_1 = arith.constant 0 : i32
    return %arg0, %c0_i32, %c0_i32_0 : i32, i32, i32
  }
  func.func @transform_1(%arg0: i32) -> (i32, i32) {
    %c0_i32 = arith.constant 0 : i32
    %c0_i32_0 = arith.constant 0 : i32
    %c0_i32_1 = arith.constant 0 : i32
    return %c0_i32, %c0_i32_0 : i32, i32
  }
  func.func @transform_2(%arg0: i32) -> (i32, i32) {
    %c0_i32 = arith.constant 0 : i32
    %c0_i32_0 = arith.constant 0 : i32
    %c0_i32_1 = arith.constant 0 : i32
    return %c0_i32, %c0_i32_0 : i32, i32
  }
  func.func @transform_3(%arg0: i32) -> (i32, i32, i32) {
    %c0_i32 = arith.constant 0 : i32
    %c0_i32_0 = arith.constant 0 : i32
    %c0_i32_1 = arith.constant 0 : i32
    return %arg0, %c0_i32, %c0_i32_0 : i32, i32, i32
  }
}

</mosaic_0001>

<bundles_post_ra>
// kernel: tpu_custom_call.1
= control target key start
LH: loop header
LB: loop body
LE: loop exit
PB: predicated region body
PF: predicated region fallthrough
CT: control target
= control target key end

     0   :  { %8 = vsyncpa [#allocation5], 0  ;;  %s1025_s0 = inlined_call_operand.hbm [shape: bf16[2,32,256], index: 0, kind: input, shape index: {}]   ;;  %s1026_s1 = inlined_call_operand.hbm [shape: bf16[8,128], index: 1, kind: input, shape index: {}]   ;;  %s1027_s2 = inlined_call_operand.vmem [shape: f32[1,128], index: 2, kind: input, shape index: {}]   ;;  %s1028_s3 = inlined_call_operand.hbm [shape: f32[2,8,128], index: 3, kind: output, shape index: {}]  }
   0x1   :  { %10 = vsyncpa [#allocation5 + $0x1], 0 }
   0x2   :  { %11 = vsyncpa [#allocation8], 0 }
   0x3   :  { %12 = vsyncpa [#allocation6], 0 }
   0x4   :  { %14 = vsyncpa [#allocation6 + $0x1], 0  ;;  %s817_s12 = smov 0   ;;  %s819_s13 = smov 0  }
   0x5   :  { %s821_s14 = smov 0   ;;  %s823_s15 = smov 0  }
   0x6 LB: > { %s838_s16 = sadd.s32 4294967295, %s785_s15   ;;  %s535_s17 = sadd.s32 4294967294, %s785_s15   ;;  %s785_s15 = sphi %s823_s15, %s1051_s15   ;;  %s781_s14 = sphi %s821_s14, %s1050_s14   ;;  %s777_s13 = sphi %s819_s13, %s1049_s13   ;;  %s773_s12 = sphi %s817_s12, %s1048_s12  }
   0x7   : > { %s842_s18 = sadd.s32 1, %s785_s15   ;;  %s27_s19 = sadd.s32 1, %s781_s14 }
   0x8   : > { %s24_s20 = ssub.s32 %s785_s15, %s842_s18  ;;  %p34_p0 = scmp.ne.s32.totalorder %s781_s14, %s777_s13 }
   0x9   : > { %p25_p1 = scmp.eq.s32.totalorder %s24_s20, 0  ;;  %p35_p2 = scmp.eq.s32.totalorder %s785_s15, 0 }
   0xa   : > { %p40_p3 = scmp.ne.s32.totalorder %s777_s13, %s773_s12  ;;  %p1029_p4 = scmp.eq.s32.totalorder %s838_s16, 0 }
   0xb   : > { %s854_s21 = scalar_select %p25_p1, %s781_s14, %s27_s19  }
   0xc   : > { %p856_p5 = por %p35_p2, %p34_p0  ;;  %p862_p6 = por %p1029_p4, %p40_p3 }
   0xd   : > { %p106_p7 = scmp.eq.s32.totalorder %s838_s16, 1  ;;  %p112_p8 = scmp.eq.s32.totalorder %s535_s17, 1 }
   0xe   : > { %s1034_s23 = scalar_select %p862_p6, 1, 0 }
   0xf   : > { %p536_p9 = scmp.ge.s32.totalorder %s785_s15, 1  ;;  %p119_p10 = scmp.lt.s32.totalorder %s785_s15, 3 }
  0x10   : > { %p869_p11 = por %p106_p7, %p34_p0  ;;  %p873_p12 = por %p112_p8, %p40_p3 }
  0x11   : > { %p877_p13 = pnand %p536_p9, %p119_p10  ;;  %s787_s27 = smov [#allocation7]  }
  0x12   : > { %s1035_s24 = scalar_select %p869_p11, 1, 0 }
  0x13   : > { %s1036_s25 = scalar_select %p873_p12, 1, 0 }
  0x14   : > { %s1037_s26 = scalar_select %p877_p13, 1, 0 }
  0x15   : > { %p597_p2 = pneg %p877_p13  ;;  %s132_s28 = sshll.u32 %s787_s27, 4  ;;  %s133_s28 = int_to_ptr.vmem [resolvable:$true] %s132_s28 }
  0x16   : > { %p610_p4 = scmp.lt.s32.totalorder %s785_s15, 2  ;;  %p1038_p0 = scmp.eq.s32.totalorder %s838_s16, 0 }
  0x17   : > { %s146_s30 = sand.u32 1, %s781_s14   ;;  %s674_s6 = scalar_lea.vmem %s133_s28, 64 }
  0x18   : > { %p887_p7 = pnand %p597_p2, %p1038_p0  ;;  %p894_p3 = pnand %p610_p4, %p856_p5 }
  0x19   : > { %s539_s5 = sshll.u32 %s146_s30, 5  ;;  %p675_p9 = scmp.ne.s32.totalorder %s133_s28, %s674_s6 }
  0x1a   : > { %p665_p8 = pneg %p887_p7  ;;  %p682_p12 = scmp.lt.s32.totalorder %s133_s28, %s133_s28 }
  0x1b   : > { %p683_p11 = scmp.lt.s32.totalorder %s674_s6, %s674_s6 }
  0x1c   : > { %p677_p10 = pnand %p675_p9, %p665_p8 }
  0x1d   : > { %p684_p2 = por %p683_p11, %p682_p12 }
  0x1e   : > { %p678_p1 = pneg %p677_p10 }
  0x20   : > { %p685_p0 = pnand %p684_p2, %p678_p1 }
  0x22   : > { %688 = shalt.err (!%p685_p0)
}
  0x23   : > { %600 = dma.hbm_to_vmem [thread:$0]  (!%p887_p7), %s1026_s1, 64, %s133_s28, [#allocation8]  }
  0x24   : > { %s559_s9 = sshll.u32 %s785_s15, 9  ;;  %s150_s10 = scalar_lea.vmem [#allocation4], %s539_s5 }
  0x25   : > { %s157_s11 = sshll.u32 %s150_s10, 4  ;;  %s909_s20 = scalar_lea.hbm %s1025_s0, %s559_s9  ;;  %s911_s11 = int_to_ptr.vmem [resolvable:$true] %s157_s11 }
  0x26   : > { %s913_s22 = scalar_lea.sflag [#allocation5], %s146_s30  ;;  %s689_s27 = scalar_lea.hbm %s909_s20, 512 }
  0x27   : > { %p690_p4 = scmp.ne.s32.totalorder %s909_s20, %s689_s27  ;;  %p691_p5 = pneg %p894_p3 }
  0x28   : > { %s694_s5 = scalar_lea.hbm %s1025_s0, 1024  ;;  %p695_p1 = scmp.lt.s32.totalorder %s909_s20, %s1025_s0 }
  0x29   : > { %p692_p11 = pnand %p691_p5, %p690_p4  ;;  %p696_p7 = scmp.lt.s32.totalorder %s694_s5, %s689_s27 }
  0x2b   : > { %p693_p12 = pneg %p692_p11  ;;  %p697_p8 = por %p696_p7, %p695_p1 }
  0x2d   : > { %p698_p9 = pnand %p697_p8, %p693_p12 }
  0x2f   : > { %701 = shalt.err (!%p698_p9)
}
  0x30   : > { %s702_s30 = scalar_lea.vmem %s911_s11, 512  ;;  %s788_s8 = smov [#allocation4]  }
  0x31   : > { %p703_p10 = scmp.ne.s32.totalorder %s911_s11, %s702_s30  ;;  %s707_s9 = sshll.u32 %s788_s8, 4  ;;  %s708_s9 = int_to_ptr.vmem [resolvable:$false] %s707_s9 }
  0x32   : > { %s709_s10 = scalar_lea.vmem %s708_s9, 1024  ;;  %p710_p4 = scmp.lt.s32.totalorder %s911_s11, %s708_s9 }
  0x33   : > { %p705_p2 = pnand %p703_p10, %p691_p5  ;;  %p711_p11 = scmp.lt.s32.totalorder %s709_s10, %s702_s30 }
  0x35   : > { %p706_p0 = pneg %p705_p2  ;;  %p712_p6 = por %p711_p11, %p710_p4 }
  0x37   : > { %p713_p13 = pnand %p712_p6, %p706_p0 }
  0x39   : > { %716 = shalt.err (!%p713_p13)
}
  0x3a   : > { %s789_s17 = smov 128   ;;  %s790_s19 = smov 8  }
  0x3b   : > { %604 = dma.hbm_to_vmem [thread:$0]  (!%p894_p3), %s909_s20, 512, %s911_s11, %s913_s22, %s789_s17, %s789_s17, %s790_s19  }
  0x3c   : > { %p1041_p5 = scmp.ne.s32.totalorder %s1037_s26, 0 }
  0x3d   : > { %s937_s27 = sand.u32 (!%p1041_p5), 1, %s777_s13   ;;  %p1042_p6 = scmp.ne.s32.totalorder (!%p1041_p5), %s1034_s23, 0 }
  0x3e   : > { %169 = sbr.rel (%p1041_p5) target bundleno = 748 (0x2ec), region = 32  ;;  %s543_s28 = sshll.u32 (!%p1041_p5), %s937_s27, 5 }
  0x3f   : > { %s172_s29 = scalar_lea.sflag (!%p1041_p5), [#allocation5], %s937_s27  ;;  %s941_s5 = scalar_lea.vmem (!%p1041_p5), [#allocation4], %s543_s28 }
  0x43   : > { %760 = dma.done.wait (%p1042_p6), %s172_s29, 512  }
  0x44   : > { %762 = vsyncadd (%p1042_p6), %s172_s29, 4294966784  ;;  %p1043_p13 = scmp.eq.s32.totalorder %s838_s16, 0 }
  0x46   : > { %764 = dma.done.wait (%p1043_p13), [#allocation8], 64   ;;  %p1044_p3 = pmov %p1043_p13 }
  0x47   : > { %v294_v0 = vld [vmem:[%s941_s5 + $0x10] sm:$0xff]  ;;  %s791_s26 = smov 118   ;;  %s792_s4 = smov 119   ;;  %v302_v1 = vld [vmem:[%s941_s5 + $0x18] sm:$0xff]  ;;  %v793_v2 = vmov 0.0   ;;  %v270_v3 = vld [vmem:[%s941_s5 + $0x8] sm:$0xff] }
  0x48   : > { %766 = vsyncadd (%p1044_p3), [#allocation8], 4294967232  ;;  %296 = vrot.lane.b32.xlu0 %v294_v0, %s791_s26  ;;  %280 = vrot.lane.b32.xlu1 %v294_v0, %s792_s4  ;;  %v261_v4 = vld [vmem:[%s941_s5] sm:$0xff]  ;;  %v224_v5 = vld [vmem:[%s941_s5 + $0x10] sm:$0xf]  ;;  %s794_s23 = smov 127  }
  0x49   : > { %569 = vmatprep.subr.bf16.mxu0 %v793_v2  ;;  %v226_v6 = vld [vmem:[%s941_s5 + $0x18] sm:$0xf]  ;;  %225 = vst [vmem:[#allocation2 + $0x10] sm:$0xf] %v224_v5  ;;  %v203_v7 = vld [vmem:[%s941_s5] sm:$0xf] }
  0x4a   : > { %227 = vst [vmem:[#allocation2 + $0x14] sm:$0xf] %v226_v6  ;;  %v205_v8 = vld [vmem:[%s941_s5 + $0x8] sm:$0xf]  ;;  %204 = vst [vmem:[#allocation2] sm:$0xf] %v203_v7 }
  0x4b   : > { %206 = vst [vmem:[#allocation2 + $0x4] sm:$0xf] %v205_v8  ;;  %vm795_vm0 = vmmov 0   ;;  %vm266_vm1 = vcmask 965632   ;;  %vm249_vm2 = vcmask 973824   ;;  %vm212_vm3 = vcmask 1039360  }
  0x4c   : > { %304 = vrot.lane.b32.xlu0 %v302_v1, %s791_s26  ;;  %288 = vrot.lane.b32.xlu1 %v302_v1, %s792_s4  ;;  %v310_v53 = vld [vmem:[#allocation7] sm:$0xf]  ;;  %s545_s22 = sshll.u32 %s937_s27, 3  ;;  %s556_s6 = sshll.u32 %s838_s16, 7 }
  0x4d   : > { %585 = vmatprep.mubr.msk.bf16.mxu0 %vm795_vm0, %v793_v2  ;;  %v554_v54 = vld [vmem:[%s1027_s2] ss:$0 sm:$0xff]  ;;  %s201_s7 = scalar_lea.vmem [#allocation9], %s545_s22  ;;  %s988_s10 = scalar_lea.hbm %s1028_s3, %s556_s6 }
  0x4e   : > { %s455_s30 = sshll.u32 %s201_s7, 4  ;;  %s442_s17 = scalar_lea.sflag [#allocation6], %s937_s27  ;;  %s456_s30 = int_to_ptr.vmem [resolvable:$true] %s455_s30 }
  0x4f   : > { %s717_s19 = scalar_lea.vmem %s456_s30, 128  ;;  %p1045_p1 = scmp.ne.s32.totalorder %s1035_s24, 0 }
  0x50   : > { %272 = vrot.lane.b32.xlu1 %v270_v3, %s791_s26  ;;  %263 = vrot.lane.b32.xlu0 %v261_v4, %s791_s26  ;;  %p718_p12 = scmp.ne.s32.totalorder %s456_s30, %s717_s19  ;;  %s796_s28 = smov [#allocation9]  }
  0x51   : > { %v658_v50 = vld [vmem:[#allocation2 + $0x10] sm:$0xff]   ;;  %s721_s16 = sshll.u32 %s796_s28, 4  ;;  %s722_s16 = int_to_ptr.vmem [resolvable:$false] %s721_s16 }
  0x52   : > { %v660_v52 = vld [vmem:[#allocation2] sm:$0xff]   ;;  %p719_p7 = pnand %p718_p12, %p1045_p1  ;;  %s723_s29 = scalar_lea.vmem %s722_s16, 256 }
  0x53   : > { %p724_p9 = scmp.lt.s32.totalorder %s456_s30, %s722_s16  ;;  %p725_p10 = scmp.lt.s32.totalorder %s723_s29, %s717_s19 }
  0x54   : > { %255 = vrot.lane.b32.xlu1 %v270_v3, %s792_s4  ;;  %246 = vrot.lane.b32.xlu0 %v261_v4, %s792_s4  ;;  %p720_p8 = pneg %p719_p7 }
  0x55   : > { %p726_p2 = por %p725_p10, %p724_p9 }
  0x57   : > { %p727_p0 = pnand %p726_p2, %p720_p8 }
  0x58   : > { %238 = vrot.lane.b32.xlu1 %v302_v1, %s794_s23  ;;  %230 = vrot.lane.b32.xlu0 %v294_v0, %s794_s23 }
  0x5c   : > { %218 = vrot.lane.b32.xlu1 %v270_v3, %s794_s23  ;;  %209 = vrot.lane.b32.xlu0 %v261_v4, %s794_s23 }
  0xba   : > { %v297_v9 = vpop.permute.xlu0 %296  ;;  %v281_v10 = vpop.permute.xlu1 %280 }
  0xbb   : > { %v298_v11 = vrot.slane %v297_v9, 4  ;;  %v282_v12 = vrot.slane %v281_v10, 4 }
  0xbd   : > { %v299_v13 = vsel %vm266_vm1, %v297_v9, %v298_v11  ;;  %v283_v14 = vsel %vm249_vm2, %v281_v10, %v282_v12 }
  0xbe   : > { %301 = vst [vmem:[#allocation2 + $0x38] sm:$0xf] %v299_v13  ;;  %285 = vst [vmem:[#allocation2 + $0x30] sm:$0xf] %v283_v14  ;;  %v305_v15 = vpop.permute.xlu0 %304  ;;  %v289_v16 = vpop.permute.xlu1 %288 }
  0xbf   : > { %v306_v17 = vrot.slane %v305_v15, 4  ;;  %v290_v18 = vrot.slane %v289_v16, 4 }
  0xc1   : > { %v307_v19 = vsel %vm266_vm1, %v305_v15, %v306_v17  ;;  %v291_v20 = vsel %vm249_vm2, %v289_v16, %v290_v18 }
  0xc2   : > { %309 = vst [vmem:[#allocation2 + $0x3c] sm:$0xf] %v307_v19  ;;  %293 = vst [vmem:[#allocation2 + $0x34] sm:$0xf] %v291_v20  ;;  %v273_v21 = vpop.permute.xlu1 %272  ;;  %v264_v22 = vpop.permute.xlu0 %263 }
  0xc3   : > { %v274_v23 = vrot.slane %v273_v21, 4  ;;  %v265_v24 = vrot.slane %v264_v22, 4 }
  0xc5   : > { %v275_v25 = vsel %vm266_vm1, %v273_v21, %v274_v23  ;;  %v267_v26 = vsel %vm266_vm1, %v264_v22, %v265_v24 }
  0xc6   : > { %277 = vst [vmem:[#allocation2 + $0x2c] sm:$0xf] %v275_v25  ;;  %269 = vst [vmem:[#allocation2 + $0x28] sm:$0xf] %v267_v26  ;;  %v256_v27 = vpop.permute.xlu1 %255  ;;  %v247_v28 = vpop.permute.xlu0 %246 }
  0xc7   : > { %v257_v29 = vrot.slane %v256_v27, 4  ;;  %v248_v30 = vrot.slane %v247_v28, 4 }
  0xc9   : > { %v258_v31 = vsel %vm249_vm2, %v256_v27, %v257_v29  ;;  %v250_v32 = vsel %vm249_vm2, %v247_v28, %v248_v30  ;;  %v653_v33 = vld [vmem:[#allocation2 + $0x38] sm:$0xff]   ;;  %v654_v40 = vld [vmem:[#allocation2 + $0x30] sm:$0xff]  }
  0xca   : > { %260 = vst [vmem:[#allocation2 + $0x24] sm:$0xf] %v258_v31  ;;  %252 = vst [vmem:[#allocation2 + $0x20] sm:$0xf] %v250_v32  ;;  %v239_v34 = vpop.permute.xlu1 %238  ;;  %v231_v35 = vpop.permute.xlu0 %230  ;;  %570 = vmatpush3.bf16.msra.mxu0 %v653_v33 }
  0xcb   : > { %v240_v36 = vrot.slane %v239_v34, 4  ;;  %v232_v37 = vrot.slane %v231_v35, 4  ;;  %571 = vmatprep.subr.bf16.mxu0 %v793_v2 }
  0xcd   : > { %v241_v38 = vsel %vm212_vm3, %v239_v34, %v240_v36  ;;  %v233_v39 = vsel %vm212_vm3, %v231_v35, %v232_v37  ;;  %v655_v45 = vld [vmem:[#allocation2 + $0x28] sm:$0xff]  }
  0xce   : > { %243 = vst [vmem:[#allocation2 + $0x1c] sm:$0xf] %v241_v38  ;;  %235 = vst [vmem:[#allocation2 + $0x18] sm:$0xf] %v233_v39  ;;  %v219_v41 = vpop.permute.xlu1 %218  ;;  %v210_v42 = vpop.permute.xlu0 %209  ;;  %572 = vmatpush3.bf16.msra.mxu0 %v654_v40 }
  0xcf   : > { %v220_v43 = vrot.slane %v219_v41, 4  ;;  %v211_v44 = vrot.slane %v210_v42, 4  ;;  %573 = vmatprep.subr.bf16.mxu0 %v793_v2 }
  0xd1   : > { %v221_v46 = vsel %vm212_vm3, %v219_v41, %v220_v43  ;;  %v213_v47 = vsel %vm212_vm3, %v210_v42, %v211_v44  ;;  %v656_v48 = vld [vmem:[#allocation2 + $0x20] sm:$0xff]  }
  0xd2   : > { %223 = vst [vmem:[#allocation2 + $0xc] sm:$0xf] %v221_v46  ;;  %215 = vst [vmem:[#allocation2 + $0x8] sm:$0xf] %v213_v47  ;;  %574 = vmatpush3.bf16.msra.mxu0 %v655_v45 }
  0xd3   : > { %575 = vmatprep.subr.bf16.mxu0 %v793_v2 }
  0xd5   : > { %v657_v49 = vld [vmem:[#allocation2 + $0x18] sm:$0xff]  }
  0xd6   : > { %576 = vmatpush3.bf16.msra.mxu0 %v656_v48 }
  0xd7   : > { %577 = vmatprep.subr.bf16.mxu0 %v793_v2 }
  0xd9   : > { %v659_v51 = vld [vmem:[#allocation2 + $0x8] sm:$0xff]  }
  0xda   : > { %578 = vmatpush3.bf16.msra.mxu0 %v657_v49 }
  0xdb   : > { %579 = vmatprep.subr.bf16.mxu0 %v793_v2 }
  0xde   : > { %580 = vmatpush3.bf16.msra.mxu0 %v658_v50 }
  0xdf   : > { %581 = vmatprep.subr.bf16.mxu0 %v793_v2 }
  0xe2   : > { %582 = vmatpush3.bf16.msra.mxu0 %v659_v51 }
  0xe3   : > { %583 = vmatprep.subr.bf16.mxu0 %v793_v2 }
  0xe6   : > { %584 = vmatpush3.bf16.msra.mxu0 %v660_v52 }
  0xe9   : > { %586 = vmatmul.mubr.bf16.vlgmr.msra.gmra.mxu0 %v310_v53 }
 0x1a9   : > { %v409_v55 = vpop.f32.mrf.mxu0 }
 0x1aa   : > { %v424_v56 = vmul.f32 %v554_v54, %v409_v55 }
 0x1ab   : > { %v587_v57 = vpop.f32.mrf.mxu0 }
 0x1ac   : > { %425 = vadd.xlane.f32.xlu0 %v424_v56 }
 0x1ad   : > { %v412_v58 = vpop.f32.mrf.mxu0 }
 0x1af   : > { %v588_v59 = vpop.f32.mrf.mxu0 }
 0x235   : > { %v426_v60 = vpop.xlane.xlu0 %425 }
 0x236   : > { %v427_v61 = vmul.f32 0.015625, %v426_v60 }
 0x238   : > { %v428_v62 = vsub.f32 %v409_v55, %v427_v61 }
 0x23a   : > { %v429_v63 = vmul.f32 %v554_v54, %v428_v62 }
 0x23c   : > { %v430_v0 = vmul.f32 %v429_v63, %v429_v63 }
 0x23e   : > { %431 = vadd.xlane.f32.xlu1 %v430_v0 }
 0x2c7   : > { %v432_v1 = vpop.xlane.xlu1 %431 }
 0x2c8   : > { %v433_v2 = vmul.f32 0.015625, %v432_v1 }
 0x2ca   : > { %v434_v3 = vadd.f32 1e-05, %v433_v2 }
 0x2cc   : > { %661 = vrsqrt.f32 %v434_v3 }
 0x2d9   : > { %v662_v4 = vpop.eup %661 }
 0x2da   : > { %v436_v5 = vmul.f32 %v662_v4, %v428_v62 }
 0x2dc   : > { %vm437_vm4 = vcmp.ge.f32.partialorder %v436_v5, 0.0  ;;  %v438_v6 = vmul.f32 0.2, %v436_v5 }
 0x2de   : > { %v439_v7 = vsel %vm437_vm4, %v436_v5, %v438_v6 }
 0x2df   : > { %440 = vst [vmem:[%s201_s7] sm:$0xff] %v439_v7 }
 0x2e0   : > { %730 = shalt.err (!%p727_p0)
}
 0x2e1   : > { %s731_s5 = scalar_lea.hbm %s988_s10, 128  ;;  %s735_s4 = scalar_lea.hbm %s1028_s3, 256 }
 0x2e2   : > { %p732_p4 = scmp.ne.s32.totalorder %s988_s10, %s731_s5  ;;  %p736_p6 = scmp.lt.s32.totalorder %s988_s10, %s1028_s3 }
 0x2e3   : > { %p737_p13 = scmp.lt.s32.totalorder %s735_s4, %s731_s5 }
 0x2e4   : > { %p733_p11 = pnand %p732_p4, %p1045_p1 }
 0x2e5   : > { %p738_p3 = por %p737_p13, %p736_p6 }
 0x2e6   : > { %p734_p5 = pneg %p733_p11 }
 0x2e8   : > { %p739_p12 = pnand %p738_p3, %p734_p5 }
 0x2ea   : > { %742 = shalt.err (!%p739_p12)
}
 0x2eb   : > { %595 = dma.vmem_to_hbm [thread:$0]  (%p1045_p1), %s456_s30, 128, %s988_s10, %s442_s17  }
 0x2ec PF: > { %s467_s20 = sand.u32 1, %s773_s12   ;;  %p1046_p7 = scmp.ne.s32.totalorder %s1036_s25, 0 }
 0x2ed   : > { %p1047_p8 = scmp.ge.s32.totalorder %s785_s15, 2  ;;  %s468_s22 = scalar_lea.sflag [#allocation6], %s467_s20 }
 0x2ef   : > { %p606_p9 = pnand %p1047_p8, %p1046_p7 }
 0x2f1   : > { %p607_p10 = pneg %p606_p9 }
 0x2f3   : > { %768 = dma.done.wait (%p607_p10), %s468_s22, 128  }
 0x2f4   : > { %770 = vsyncadd (%p607_p10), %s468_s22, 4294967168  ;;  %p17_p2 = scmp.ge.s32.totalorder %s842_s18, 4   ;;  %s1048_s12 = smov %s777_s13 }
 0x2f5   : > { %s1049_s13 = smov %s781_s14  ;;  %s1050_s14 = smov %s854_s21 }
 0x2f6   : > { %s1051_s15 = smov %s842_s18  ;;  %19 = sbr.rel (!%p17_p2) target bundleno = 6 (0x6), region = 81 }
 0x2fb   :  { %473 = vsyncpa [#allocation5], 1 }
 0x2fc   :  { %475 = vsyncpa [#allocation5 + $0x1], 1 }
 0x2fd   :  { %476 = vsyncpa [#allocation8], 1 }
 0x2fe   :  { %477 = vsyncpa [#allocation6], 1 }
 0x2ff   :  { %479 = vsyncpa [#allocation6 + $0x1], 1 }

</bundles_post_ra>
